<compile_context>
chip_gen: v5e
topology: v5e:2x2
jax: 0.10.0
libtpu: 0.0.40
codegen_flags: <defaults>
</compile_context>

<pallas_src>
import jax
import jax.numpy as jnp
from jax.experimental import pallas as pl
from jax.experimental.pallas import tpu as pltpu


# ----------------------------- Pallas kernel --------------------------------
def unn_kernel(xt_ref, w12_ref, wh0_ref, wh1_ref, wf_ref, b_ref, out_ref):
    """One batch tile. Transposed layout: features on sublanes, batch on lanes.

    xt_ref : [F, TB]   concat(data, mu_sig)^T          (compute dtype)
    w12_ref: [H, F]    block-diag(W1, W2)              (compute dtype)
    wh*_ref: [H, H]    hidden weights (out, in)        (compute dtype)
    wf_ref : [phi, H]  final weight   (out, in)        (compute dtype)
    b_ref  : [H, 4]    packed biases (b12 | bh0 | bh1 | bf-padded)  (f32)
    out_ref: [phi, TB] output^T                        (f32)
    """
    x = xt_ref[...]                                            # [F, TB]

    # Fused first layer: blockdiag(W1,W2) @ [data; mu_sig]^T == concat(y0,y1)^T
    y = jnp.dot(w12_ref[...], x, preferred_element_type=jnp.float32)
    y = jnp.tanh(y + b_ref[:, 0:1])                            # [H, TB] f32

    # Hidden layer 0
    y = jnp.dot(wh0_ref[...], y.astype(wh0_ref.dtype),
                preferred_element_type=jnp.float32)
    y = jnp.tanh(y + b_ref[:, 1:2])

    # Hidden layer 1
    y = jnp.dot(wh1_ref[...], y.astype(wh1_ref.dtype),
                preferred_element_type=jnp.float32)
    y = jnp.tanh(y + b_ref[:, 2:3])

    # Final projection: [phi, H] @ [H, TB] -> lane-dense [phi, TB]
    phi = wf_ref.shape[0]
    out = jnp.dot(wf_ref[...], y.astype(wf_ref.dtype),
                  preferred_element_type=jnp.float32)
    out_ref[...] = (out + b_ref[0:phi, 3:4]).astype(out_ref.dtype)


# ------------------------------- Wrapper -------------------------------------
def unn_forward(data, mu_sig, params, *, tile_b=512, compute_dtype=jnp.float32):
    """data: [B, feat_phi], mu_sig: [B, 2]  ->  [B, phi_size] (float32)."""
    B = data.shape[0]
    H = params["wh0t"].shape[0]
    phi = params["wft"].shape[0]
    F = params["w12t"].shape[1]          # feat_phi_size + 2

    # Lane-friendly batch tiling: tile is a multiple of 128 lanes; small batches
    # collapse to one 128-lane tile.  Padded columns are zeros and discarded.
    tb = max(128, (int(tile_b) // 128) * 128)
    if B <= tb:
        tb = max(128, ((B + 127) // 128) * 128)
    n_tiles = pl.cdiv(B, tb)
    b_pad = n_tiles * tb

    # Wrapper-side input fusion + transpose so batch maps to lanes.
    xcat = jnp.concatenate([data, mu_sig], axis=1)              # [B, F]
    xt = jnp.zeros((F, b_pad), compute_dtype)
    xt = xt.at[:, :B].set(xcat.T.astype(compute_dtype))         # [F, B_pad]

    w12 = params["w12t"].astype(compute_dtype)
    wh0 = params["wh0t"].astype(compute_dtype)
    wh1 = params["wh1t"].astype(compute_dtype)
    wf = params["wft"].astype(compute_dtype)
    b_all = params["b_all"]                                     # f32, [H, 4]

    itemsize = jnp.dtype(compute_dtype).itemsize
    flops = 2 * b_pad * (H * F + 2 * H * H + phi * H)
    bytes_accessed = (
        (F * b_pad) * itemsize                    # streamed activations in
        + (phi * b_pad) * 4                       # output (f32)
        + (H * F + 2 * H * H + phi * H) * itemsize + H * 4 * 4)  # weights+bias
    cost = pl.CostEstimate(flops=int(flops),
                           transcendentals=int(3 * b_pad * H),
                           bytes_accessed=int(bytes_accessed))

    resident = lambda i: (0, 0)          # weights/bias: same block every step
    grid_spec = pltpu.PrefetchScalarGridSpec(
        num_scalar_prefetch=0,
        grid=(n_tiles,),
        in_specs=[
            pl.BlockSpec((F, tb), lambda i: (0, i)),     # streamed activations
            pl.BlockSpec((H, F), resident),              # W12 (block-diag)
            pl.BlockSpec((H, H), resident),              # Wh0
            pl.BlockSpec((H, H), resident),              # Wh1
            pl.BlockSpec((phi, H), resident),            # Wf
            pl.BlockSpec((H, 4), resident),              # packed biases
        ],
        out_specs=pl.BlockSpec((phi, tb), lambda i: (0, i)),
    )

    out_t = pl.pallas_call(
        unn_kernel,
        out_shape=jax.ShapeDtypeStruct((phi, b_pad), jnp.float32),
        grid_spec=grid_spec,
        compiler_params=pltpu.CompilerParams(
            dimension_semantics=("parallel",),           # megacore on v7x
            vmem_limit_bytes=32 * 1024 * 1024),          # fits v5e/v6e/v7x
        cost_estimate=cost,
    )(xt, w12, wh0, wh1, wf, b_all)

    return out_t[:, :B].T                                # [B, phi]


# ----------------------- Deterministic parameter init ------------------------
def init_params(key, feat_phi_size, phi_size, hidden_neurons):
    """PyTorch nn.Linear-style U(-1/sqrt(fan_in), 1/sqrt(fan_in)).

    Weights are stored in (out, in) layout for the transposed kernel; the first
    two layers are additionally packed into a block-diagonal W12 and all biases
    into one [H, 4] matrix."""
    H = hidden_neurons
    half = H // 2
    F = feat_phi_size + 2

    def linear_t(k, fan_in, fan_out):
        kw, kb = jax.random.split(k)
        bound = float(fan_in) ** -0.5
        wt = jax.random.uniform(kw, (fan_out, fan_in), jnp.float32, -bound, bound)
        b = jax.random.uniform(kb, (fan_out,), jnp.float32, -bound, bound)
        return wt, b

    keys = jax.random.split(key, 5)
    w1t, b1 = linear_t(keys[0], feat_phi_size, half)     # [half, feat]
    w2t, b2 = linear_t(keys[1], 2, half)                 # [half, 2]
    wh0t, bh0 = linear_t(keys[2], H, H)
    wh1t, bh1 = linear_t(keys[3], H, H)
    wft, bf = linear_t(keys[4], H, phi_size)

    # Block-diagonal fused input weight: concat(y0, y1) == W12 @ [data; mu_sig]^T
    w12t = jnp.zeros((H, F), jnp.float32)
    w12t = w12t.at[:half, :feat_phi_size].set(w1t)
    w12t = w12t.at[half:, feat_phi_size:].set(w2t)
    b12 = jnp.concatenate([b1, b2])                      # [H]

    bf_pad = jnp.zeros((H,), jnp.float32).at[:phi_size].set(bf)
    b_all = jnp.stack([b12, bh0, bh1, bf_pad], axis=1)   # [H, 4]

    return dict(w12t=w12t, wh0t=wh0t, wh1t=wh1t, wft=wft, b_all=b_all,
                # unfused copies for the pure-JAX reference
                w1t=w1t, b1=b1, w2t=w2t, b2=b2, bh0=bh0, bh1=bh1, bf=bf)


# Pure-JAX reference (mirrors the PyTorch forward exactly).
def unn_ref(data, mu_sig, p):
    y0 = jnp.tanh(data @ p["w1t"].T + p["b1"])
    y1 = jnp.tanh(mu_sig @ p["w2t"].T + p["b2"])
    y = jnp.concatenate([y0, y1], axis=1)
    y = jnp.tanh(y @ p["wh0t"].T + p["bh0"])
    y = jnp.tanh(y @ p["wh1t"].T + p["bh1"])
    return y @ p["wft"].T + p["bf"]


if __name__ == "__main__":
    # Small shapes consistent with the module's forward.
    B = 300                 # exercises batch padding + a multi-step grid
    feat_phi_size = 16
    hidden_neurons = 32     # hidden_neurons // 2 = 16
    phi_size = 1

    key = jax.random.PRNGKey(0)
    k_data, k_mu, k_params = jax.random.split(key, 3)
    data = jax.random.normal(k_data, (B, feat_phi_size), jnp.float32)
    mu_sig = jax.random.normal(k_mu, (B, 2), jnp.float32)
    params = init_params(k_params, feat_phi_size, phi_size, hidden_neurons)

    ref = unn_ref(data, mu_sig, params)

    # Full-precision path (matches the PyTorch f32 semantics).
    out = jax.block_until_ready(
        unn_forward(data, mu_sig, params, tile_b=128, compute_dtype=jnp.float32))
    assert out.shape == (B, phi_size), out.shape
    assert jnp.allclose(out, ref, atol=1e-4, rtol=1e-4), "f32 mismatch vs reference"

    # bf16-streamed matmul inputs (HBM-bandwidth optimization for large B);
    # accumulation/tanh stay f32, so only bf16-level rounding remains.
    out_bf16 = jax.block_until_ready(
        unn_forward(data, mu_sig, params, tile_b=128, compute_dtype=jnp.bfloat16))
    assert out_bf16.shape == (B, phi_size), out_bf16.shape
    assert bool(jnp.all(jnp.isfinite(out_bf16)))
    assert jnp.allclose(out_bf16, ref, atol=1e-1, rtol=1e-1), "bf16 path diverged"

    print("KERNEL_OK")
</pallas_src>

<mosaic_0001>
module attributes {stable_mosaic.version = 11 : i64} {
  func.func @unn_kernel(%arg0: i32, %arg1: memref<18x128xf32, #tpu.memory_space<vmem>>, %arg2: memref<32x18xf32, #tpu.memory_space<vmem>>, %arg3: memref<32x32xf32, #tpu.memory_space<vmem>>, %arg4: memref<32x32xf32, #tpu.memory_space<vmem>>, %arg5: memref<1x32xf32, #tpu.memory_space<vmem>>, %arg6: memref<32x4xf32, #tpu.memory_space<vmem>>, %arg7: memref<1x128xf32, #tpu.memory_space<vmem>>) attributes {dimension_semantics = [#tpu.dimension_semantics<parallel>], iteration_bounds = array<i64: 3>, scalar_prefetch = 0 : i64, scratch_operands = 0 : i64, tpu.core_type = #tpu.core_type<tc>, window_params = [{transform_indices = @transform_0, window_bounds = array<i64: 18, 128>}, {pipeline_mode = #tpu.pipeline_mode<synchronous>, transform_indices = @transform_1, window_bounds = array<i64: 32, 18>}, {pipeline_mode = #tpu.pipeline_mode<synchronous>, transform_indices = @transform_2, window_bounds = array<i64: 32, 32>}, {pipeline_mode = #tpu.pipeline_mode<synchronous>, transform_indices = @transform_3, window_bounds = array<i64: 32, 32>}, {pipeline_mode = #tpu.pipeline_mode<synchronous>, transform_indices = @transform_4, window_bounds = array<i64: 1, 32>}, {pipeline_mode = #tpu.pipeline_mode<synchronous>, transform_indices = @transform_5, window_bounds = array<i64: 32, 4>}, {transform_indices = @transform_6, window_bounds = array<i64: 1, 128>}]} {
    %c0 = arith.constant 0 : index
    %c0_0 = arith.constant 0 : index
    %0 = vector.load %arg1[%c0, %c0_0] : memref<18x128xf32, #tpu.memory_space<vmem>>, vector<18x128xf32>
    %c0_1 = arith.constant 0 : index
    %c0_2 = arith.constant 0 : index
    %1 = vector.load %arg2[%c0_1, %c0_2] : memref<32x18xf32, #tpu.memory_space<vmem>>, vector<32x18xf32>
    %cst = arith.constant dense<0.000000e+00> : vector<32x128xf32>
    %2 = tpu.matmul %1, %0, %cst {dimension_numbers = #tpu.dot_dimension_numbers<[1], [0], [0], [1], [0, 0, 1, 1], [], []>} : vector<32x18xf32>, vector<18x128xf32>, vector<32x128xf32> -> vector<32x128xf32>
    %c0_3 = arith.constant 0 : index
    %c0_4 = arith.constant 0 : index
    %3 = vector.load %arg6[%c0_3, %c0_4] : memref<32x4xf32, #tpu.memory_space<vmem>>, vector<32x1xf32>
    %4 = vector.broadcast %3 : vector<32x1xf32> to vector<32x128xf32>
    %5 = arith.addf %2, %4 : vector<32x128xf32>
    %6 = math.tanh %5 : vector<32x128xf32>
    %c0_5 = arith.constant 0 : index
    %c0_6 = arith.constant 0 : index
    %7 = vector.load %arg3[%c0_5, %c0_6] : memref<32x32xf32, #tpu.memory_space<vmem>>, vector<32x32xf32>
    %cst_7 = arith.constant dense<0.000000e+00> : vector<32x128xf32>
    %8 = tpu.matmul %7, %6, %cst_7 {dimension_numbers = #tpu.dot_dimension_numbers<[1], [0], [0], [1], [0, 0, 1, 1], [], []>} : vector<32x32xf32>, vector<32x128xf32>, vector<32x128xf32> -> vector<32x128xf32>
    %c0_8 = arith.constant 0 : index
    %c1 = arith.constant 1 : index
    %9 = vector.load %arg6[%c0_8, %c1] : memref<32x4xf32, #tpu.memory_space<vmem>>, vector<32x1xf32>
    %10 = vector.broadcast %9 : vector<32x1xf32> to vector<32x128xf32>
    %11 = arith.addf %8, %10 : vector<32x128xf32>
    %12 = math.tanh %11 : vector<32x128xf32>
    %c0_9 = arith.constant 0 : index
    %c0_10 = arith.constant 0 : index
    %13 = vector.load %arg4[%c0_9, %c0_10] : memref<32x32xf32, #tpu.memory_space<vmem>>, vector<32x32xf32>
    %cst_11 = arith.constant dense<0.000000e+00> : vector<32x128xf32>
    %14 = tpu.matmul %13, %12, %cst_11 {dimension_numbers = #tpu.dot_dimension_numbers<[1], [0], [0], [1], [0, 0, 1, 1], [], []>} : vector<32x32xf32>, vector<32x128xf32>, vector<32x128xf32> -> vector<32x128xf32>
    %c0_12 = arith.constant 0 : index
    %c2 = arith.constant 2 : index
    %15 = vector.load %arg6[%c0_12, %c2] : memref<32x4xf32, #tpu.memory_space<vmem>>, vector<32x1xf32>
    %16 = vector.broadcast %15 : vector<32x1xf32> to vector<32x128xf32>
    %17 = arith.addf %14, %16 : vector<32x128xf32>
    %18 = math.tanh %17 : vector<32x128xf32>
    %c0_13 = arith.constant 0 : index
    %c0_14 = arith.constant 0 : index
    %19 = vector.load %arg5[%c0_13, %c0_14] : memref<1x32xf32, #tpu.memory_space<vmem>>, vector<1x32xf32>
    %cst_15 = arith.constant dense<0.000000e+00> : vector<1x128xf32>
    %20 = tpu.matmul %19, %18, %cst_15 {dimension_numbers = #tpu.dot_dimension_numbers<[1], [0], [0], [1], [0, 0, 1, 1], [], []>} : vector<1x32xf32>, vector<32x128xf32>, vector<1x128xf32> -> vector<1x128xf32>
    %c0_16 = arith.constant 0 : index
    %c3 = arith.constant 3 : index
    %21 = vector.load %arg6[%c0_16, %c3] : memref<32x4xf32, #tpu.memory_space<vmem>>, vector<1x1xf32>
    %22 = vector.broadcast %21 : vector<1x1xf32> to vector<1x128xf32>
    %23 = arith.addf %20, %22 : vector<1x128xf32>
    %c0_17 = arith.constant 0 : index
    %c0_18 = arith.constant 0 : index
    %24 = vector.load %arg7[%c0_17, %c0_18] : memref<1x128xf32, #tpu.memory_space<vmem>>, vector<1x128xf32>
    tpu.vector_store %arg7[%c0_17, %c0_18], %23 {strides = array<i32>} : memref<1x128xf32, #tpu.memory_space<vmem>>, vector<1x128xf32>,
    return
  }
  func.func @transform_0(%arg0: i32) -> (i32, i32) {
    %c0_i32 = arith.constant 0 : i32
    %c0_i32_0 = arith.constant 0 : i32
    return %c0_i32, %arg0 : i32, i32
  }
  func.func @transform_1(%arg0: i32) -> (i32, i32) {
    %c0_i32 = arith.constant 0 : i32
    %c0_i32_0 = arith.constant 0 : i32
    %c0_i32_1 = arith.constant 0 : i32
    return %c0_i32, %c0_i32_0 : i32, i32
  }
  func.func @transform_2(%arg0: i32) -> (i32, i32) {
    %c0_i32 = arith.constant 0 : i32
    %c0_i32_0 = arith.constant 0 : i32
    %c0_i32_1 = arith.constant 0 : i32
    return %c0_i32, %c0_i32_0 : i32, i32
  }
  func.func @transform_3(%arg0: i32) -> (i32, i32) {
    %c0_i32 = arith.constant 0 : i32
    %c0_i32_0 = arith.constant 0 : i32
    %c0_i32_1 = arith.constant 0 : i32
    return %c0_i32, %c0_i32_0 : i32, i32
  }
  func.func @transform_4(%arg0: i32) -> (i32, i32) {
    %c0_i32 = arith.constant 0 : i32
    %c0_i32_0 = arith.constant 0 : i32
    %c0_i32_1 = arith.constant 0 : i32
    return %c0_i32, %c0_i32_0 : i32, i32
  }
  func.func @transform_5(%arg0: i32) -> (i32, i32) {
    %c0_i32 = arith.constant 0 : i32
    %c0_i32_0 = arith.constant 0 : i32
    %c0_i32_1 = arith.constant 0 : i32
    return %c0_i32, %c0_i32_0 : i32, i32
  }
  func.func @transform_6(%arg0: i32) -> (i32, i32) {
    %c0_i32 = arith.constant 0 : i32
    %c0_i32_0 = arith.constant 0 : i32
    return %c0_i32, %arg0 : i32, i32
  }
}

</mosaic_0001>

<bundles_post_ra>
// kernel: tpu_custom_call.1
= control target key start
LH: loop header
LB: loop body
LE: loop exit
PB: predicated region body
PF: predicated region fallthrough
CT: control target
= control target key end

     0   :  { %11 = vsyncpa [#allocation4], 0  ;;  %s1139_s0 = inlined_call_operand.vmem [shape: f32[18,384], index: 0, kind: input, shape index: {}]   ;;  %s1140_s1 = inlined_call_operand.vmem [shape: f32[32,18], index: 1, kind: input, shape index: {}]   ;;  %s1141_s2 = inlined_call_operand.hbm [shape: f32[32,32], index: 2, kind: input, shape index: {}]   ;;  %s1142_s3 = inlined_call_operand.hbm [shape: f32[32,32], index: 3, kind: input, shape index: {}]   ;;  %s1143_s4 = inlined_call_operand.vmem [shape: f32[1,32], index: 4, kind: input, shape index: {}]   ;;  %s1144_s5 = inlined_call_operand.vmem [shape: f32[32,4], index: 5, kind: input, shape index: {}]   ;;  %s1145_s6 = inlined_call_operand.hbm [shape: f32[1,384], index: 6, kind: output, shape index: {}]  }
   0x1   :  { %12 = vsyncpa [#allocation7], 0 }
   0x2   :  { %13 = vsyncpa [#allocation5], 0 }
   0x3   :  { %15 = vsyncpa [#allocation5 + $0x1], 0  ;;  %s967_s21 = smov 0   ;;  %s969_s22 = smov 0  }
   0x4   :  { %s971_s23 = smov 0   ;;  %s973_s24 = smov 0  }
   0x5 LB: > { %s988_s25 = sadd.s32 4294967295, %s922_s24   ;;  %s665_s26 = sadd.s32 4294967294, %s922_s24   ;;  %s922_s24 = sphi %s973_s24, %s1153_s24   ;;  %s918_s23 = sphi %s971_s23, %s1152_s23   ;;  %s914_s22 = sphi %s969_s22, %s1151_s22   ;;  %s910_s21 = sphi %s967_s21, %s1150_s21  }
   0x6   : > { %s992_s27 = sadd.s32 1, %s922_s24   ;;  %s28_s28 = sadd.s32 1, %s918_s23 }
   0x7   : > { %s25_s29 = ssub.s32 %s922_s24, %s992_s27  ;;  %p35_p0 = scmp.ne.s32.totalorder %s918_s23, %s914_s22 }
   0x8   : > { %p26_p1 = scmp.eq.s32.totalorder %s25_s29, 0  ;;  %p36_p2 = scmp.eq.s32.totalorder %s922_s24, 0 }
   0x9   : > { %p170_p3 = scmp.eq.s32.totalorder %s988_s25, 2  ;;  %p175_p4 = scmp.ne.s32.totalorder %s914_s22, %s910_s21 }
   0xa   : > { %s1004_s30 = scalar_select %p26_p1, %s918_s23, %s28_s28  }
   0xb   : > { %p1006_p5 = por %p36_p2, %p35_p0  ;;  %p1010_p6 = por %p170_p3, %p35_p0 }
   0xc   : > { %p176_p7 = scmp.eq.s32.totalorder %s665_s26, 2  ;;  %p666_p8 = scmp.ge.s32.totalorder %s922_s24, 1 }
   0xd   : > { %p183_p9 = scmp.lt.s32.totalorder %s922_s24, 4  ;;  %p713_p11 = scmp.eq.s32.totalorder %s988_s25, 0 }
   0xe   : > { %p1016_p10 = por %p176_p7, %p175_p4  ;;  %s197_s13 = sshll.u32 %s1141_s2, 4  ;;  %s198_s13 = int_to_ptr.hbm [resolvable:$true] %s197_s13 }
   0xf   : > { %p1021_p12 = pnand %p666_p8, %p183_p9  ;;  %s924_s14 = smov [#allocation3]  }
  0x10   : > { %s199_s15 = sshll.u32 %s924_s14, 4  ;;  %s211_s18 = sshll.u32 %s1142_s3, 4  ;;  %s200_s15 = int_to_ptr.vmem [resolvable:$true] %s199_s15  ;;  %s212_s18 = int_to_ptr.hbm [resolvable:$true] %s211_s18 }
  0x11   : > { %p702_p13 = pneg %p1021_p12  ;;  %s925_s19 = smov 128  }
  0x12   : > { %s926_s20 = smov 8   ;;  %s927_s26 = smov [#allocation6]  }
  0x13   : > { %p703_p0 = pnand %p713_p11, %p702_p13  ;;  %s213_s28 = sshll.u32 %s927_s26, 4  ;;  %s214_s28 = int_to_ptr.vmem [resolvable:$true] %s213_s28 }
  0x14   : > { %p669_p1 = scmp.ge.s32.totalorder %s922_s24, 3 }
  0x15   : > { %705 = dma.hbm_to_vmem [thread:$0]  (!%p703_p0), %s198_s13, 512, %s200_s15, [#allocation4], %s925_s19, %s925_s19, %s926_s20  }
  0x16   : > { %708 = dma.hbm_to_vmem [thread:$0]  (!%p703_p0), %s212_s18, 512, %s214_s28, [#allocation7], %s925_s19, %s925_s19, %s926_s20  }
  0x17   : > { %229 = sbr.rel (%p669_p1) target bundleno = 35 (0x23), region = 36 }
  0x1c   : > { %232 = sbr.rel (!%p1006_p5) target bundleno = 35 (0x23), region = 40  ;;  %s234_s29 = sand.u32 (%p1006_p5), 1, %s918_s23  }
  0x1d   : > { %s670_s11 = sshll.u32 (%p1006_p5), %s922_s24, 3  ;;  %s690_s12 = smul.u32 (%p1006_p5), 24, %s234_s29 }
  0x1e   : > { %s238_s17 = scalar_lea.vmem (%p1006_p5), %s1139_s0, %s670_s11 }
  0x1f   : > { %v271_v0 = vld [vmem:[%s238_s17] sm:$0xff] (%p1006_p5)  ;;  %v273_v1 = vld [vmem:[%s238_s17 + $0x18] sm:$0xff] (%p1006_p5)  ;;  %v275_v2 = vld [vmem:[%s238_s17 + $0x30] sm:$0xff] (%p1006_p5)  ;;  %s236_s13 = scalar_lea.vmem (%p1006_p5), [#allocation2], %s690_s12 }
  0x20   : > { %272 = vst [vmem:[%s236_s13] sm:$0xff] (%p1006_p5), %v271_v0 }
  0x21   : > { %274 = vst [vmem:[%s236_s13 + $0x8] sm:$0xff] %v273_v1 }
  0x22   : > { %276 = vst [vmem:[%s236_s13 + $0x10] sm:$0xff] %v275_v2 }
  0x23 PF: > { %285 = sbr.rel (%p1021_p12) target bundleno = 691 (0x2b3), region = 78  ;;  %s1046_s7 = sand.u32 (!%p1021_p12), 1, %s914_s22  }
  0x24   : > { %s691_s15 = smul.u32 (!%p1021_p12), 24, %s1046_s7 }
  0x26   : > { %s290_s18 = scalar_lea.vmem (!%p1021_p12), [#allocation2], %s691_s15 }
  0x28   : > { %897 = dma.done.wait (%p713_p11), [#allocation4], 512  }
  0x29   : > { %899 = vsyncadd (%p713_p11), [#allocation4], 4294966784 }
  0x2a   : > { %901 = dma.done.wait (%p713_p11), [#allocation7], 512  }
  0x2b   : > { %903 = vsyncadd (%p713_p11), [#allocation7], 4294966784  ;;  %v928_v3 = vmov 0   ;;  %vm370_vm0 = vcmask 1041408   ;;  %v328_v4 = vld [vmem:[%s290_s18 + $0x10] sm:$0x3]  ;;  %s578_s14 = scalar_lea.hbm %s1145_s6, %s988_s25 }
  0x2c   : > { %759 = vset.pattern.permute.xlu1 %v928_v3  ;;  %758 = vset.pattern.permute.xlu0 %v928_v3  ;;  %v327_v5 = vld [vmem:[%s290_s18 + $0x8] sm:$0xff]  ;;  %v326_v7 = vld [vmem:[%s290_s18] sm:$0xff]  ;;  %vm357_vm1 = vcmask 146432   ;;  %v335_v11 = vld [vmem:[%s1144_s5 + $0x10] sm:$0xff]  ;;  %v929_v20 = vmov 1   ;;  %vm427_vm2 = vcmask 261120  }
  0x2d   : > { %674 = vmatpush.msk.msra.mxu0 %vm370_vm0, %v328_v4  ;;  %v1060_v6 = vld [vmem:[%s1144_s5 + $0x8] sm:$0xff]  ;;  %v1066_v8 = vld [vmem:[%s1144_s5 + $0x18] sm:$0xff]  ;;  %v329_v9 = vld [vmem:[%s1140_s1] sm:$0xff]  ;;  %760 = vset.pattern.permute.xlu2 %v929_v20  ;;  %v930_v40 = vmov 2   ;;  %v931_v60 = vmov 3   ;;  %s325_s16 = scalar_lea.vmem [#allocation8], %s1046_s7 }
  0x2e   : > { %344 = vperm.xlu1 %759, %v1060_v6   ;;  %354 = vperm.xlu0 %758, %v1066_v8   ;;  %v333_v10 = vld [vmem:[%s1144_s5] sm:$0xff]  ;;  %v330_v12 = vld [vmem:[%s1140_s1 + $0x8] sm:$0xff]  ;;  %v331_v13 = vld [vmem:[%s1140_s1 + $0x10] sm:$0xff]  ;;  %s580_s17 = sshll.u32 %s325_s16, 4  ;;  %s582_s13 = sshll.u32 %s578_s14, 4  ;;  %s581_s17 = int_to_ptr.vmem [resolvable:$true] %s580_s17  ;;  %s583_s13 = int_to_ptr.hbm [resolvable:$true] %s582_s13 }
  0x2f   : > { %388 = vmatpush.msra.mxu0 %v327_v5  ;;  %v332_v14 = vld [vmem:[%s1140_s1 + $0x18] sm:$0xff]  ;;  %424 = vperm.xlu2 %760, %v1066_v8   ;;  %v407_v31 = vld [vmem:[#allocation3] sm:$0xff]  ;;  %v409_v34 = vld [vmem:[#allocation3 + $0x10] sm:$0xff]  ;;  %s570_s15 = scalar_lea.sflag [#allocation5], %s1046_s7  ;;  %s866_s18 = sshra.s32 %s583_s13, 4  ;;  %s867_s18 = int_to_ptr.hbm [resolvable:$true] %s866_s18 }
  0x30   : > { %v408_v33 = vld [vmem:[#allocation3 + $0x8] sm:$0xff]  ;;  %v410_v35 = vld [vmem:[#allocation3 + $0x18] sm:$0xff]  ;;  %v473_v52 = vld [vmem:[#allocation6] sm:$0xff]  ;;  %s868_s10 = scalar_lea.hbm %s867_s18, 1  ;;  %s872_s25 = scalar_lea.hbm %s1145_s6, 3 }
  0x31   : > { %389 = vmatpush.msra.mxu0 %v326_v7  ;;  %v474_v54 = vld [vmem:[#allocation6 + $0x8] sm:$0xff]  ;;  %v475_v55 = vld [vmem:[#allocation6 + $0x10] sm:$0xff]  ;;  %v476_v56 = vld [vmem:[#allocation6 + $0x18] sm:$0xff]  ;;  %p869_p2 = scmp.ne.s32.totalorder %s867_s18, %s868_s10  ;;  %p873_p5 = scmp.lt.s32.totalorder %s867_s18, %s1145_s6 }
  0x32   : > { %675 = vmatmul.msk.f32.vlgmr.msra.gmra.mxu0 %vm357_vm1, %v329_v9  ;;  %v539_v59 = vld [vmem:[%s1144_s5] sm:$0x1]  ;;  %p874_p7 = scmp.lt.s32.totalorder %s872_s25, %s868_s10 }
  0x33   : > { %p870_p3 = pnand %p869_p2, %p1010_p6 }
  0x34   : > { %p875_p8 = por %p874_p7, %p873_p5 }
  0x35   : > { %p871_p4 = pneg %p870_p3 }
  0x36   : > { %339 = vperm.xlu1 %759, %v333_v10   ;;  %349 = vperm.xlu0 %758, %v335_v11  }
  0x37   : > { %420 = vperm.xlu2 %760, %v335_v11   ;;  %p876_p9 = pnand %p875_p8, %p871_p4 }
  0x3a   : > { %676 = vmatmul.msk.f32.gmra.mxu0 %vm357_vm1, %v330_v12 }
  0x3e   : > { %762 = vset.pattern.permute.xlu1 %v929_v20  ;;  %761 = vset.pattern.permute.xlu0 %v929_v20 }
  0x3f   : > { %412 = vperm.xlu1 %762, %v333_v10   ;;  %416 = vperm.xlu0 %761, %v1060_v6  }
  0x40   : > { %763 = vset.pattern.permute.xlu2 %v930_v40 }
  0x41   : > { %490 = vperm.xlu2 %763, %v1066_v8  }
  0x42   : > { %677 = vmatmul.msk.f32.gmra.mxu0 %vm357_vm1, %v331_v13 }
  0x47   : > { %765 = vset.pattern.permute.xlu0 %v930_v40  ;;  %764 = vset.pattern.permute.xlu1 %v930_v40 }
  0x48   : > { %478 = vperm.xlu0 %765, %v333_v10   ;;  %486 = vperm.xlu1 %764, %v335_v11   ;;  %v538_v10 = vld [vmem:[%s1143_s4] sm:$0x1] }
  0x49   : > { %482 = vperm.xlu2 %763, %v1060_v6  }
  0x4a   : > { %678 = vmatmul.msk.f32.gmra.mxu0 %vm357_vm1, %v332_v14 }
  0x50   : > { %766 = vset.pattern.permute.xlu1 %v931_v60  ;;  %767 = vset.pattern.permute.xlu0 %v931_v60 }
  0x51   : > { %542 = vperm.xlu1 %766, %v539_v59  }
  0x89   : > { %v425_v38 = vpop.permute.xlu2 %424 }
  0x91   : > { %v421_v41 = vpop.permute.xlu2 %420 }
  0x9b   : > { %v491_v61 = vpop.permute.xlu2 %490 }
  0xa0   : > { %v355_v17 = vpop.permute.xlu0 %354  ;;  %v345_v18 = vpop.permute.xlu1 %344 }
  0xa3   : > { %v483_v0 = vpop.permute.xlu2 %482 }
  0xa8   : > { %v350_v21 = vpop.permute.xlu0 %349  ;;  %v340_v25 = vpop.permute.xlu1 %339 }
  0xaf   : > { %v391_v15 = vpop.f32.mrf.mxu0 }
  0xb0   : > { %v392_v27 = vadd.f32 %v391_v15, %v340_v25 }
  0xb1   : > { %v417_v42 = vpop.permute.xlu0 %416  ;;  %v413_v46 = vpop.permute.xlu1 %412 }
  0xb7   : > { %v394_v16 = vpop.f32.mrf.mxu0 }
  0xb8   : > { %v395_v26 = vadd.f32 %v394_v16, %v345_v18 }
  0xba   : > { %v487_v63 = vpop.permute.xlu1 %486  ;;  %v479_v4 = vpop.permute.xlu0 %478 }
  0xbf   : > { %v397_v19 = vpop.f32.mrf.mxu0 }
  0xc0   : > { %v398_v23 = vadd.f32 %v397_v19, %v350_v21 }
  0xc3   : > { %v543_v12 = vpop.permute.xlu1 %542 }
  0xc7   : > { %v400_v22 = vpop.f32.mrf.mxu0 }
  0xc8   : > { %v401_v24 = vadd.f32 %v400_v22, %v355_v17 }
  0xca   : > { %768 = vtanh.f32 %v401_v24 }
  0xcb   : > { %770 = vtanh.f32 %v398_v23 }
  0xcc   : > { %772 = vtanh.f32 %v395_v26 }
  0xcd   : > { %774 = vtanh.f32 %v392_v27 }
  0xd0   : > { %v769_v28 = vpop.eup %768 }
  0xd1   : > { %452 = vmatpush.msra.mxu1 %v769_v28  ;;  %v771_v29 = vpop.eup %770 }
  0xd2   : > { %v773_v30 = vpop.eup %772 }
  0xd3   : > { %453 = vmatpush.msra.mxu1 %v771_v29  ;;  %v775_v32 = vpop.eup %774 }
  0xd5   : > { %454 = vmatpush.msra.mxu1 %v773_v30 }
  0xd7   : > { %455 = vmatpush.msra.mxu1 %v775_v32 }
  0xd8   : > { %679 = vmatmul.msk.f32.vlgmr.msra.gmra.mxu1 %vm427_vm2, %v407_v31 }
  0xe0   : > { %680 = vmatmul.msk.f32.gmra.mxu1 %vm427_vm2, %v408_v33 }
  0xe8   : > { %681 = vmatmul.msk.f32.gmra.mxu1 %vm427_vm2, %v409_v34 }
  0xf0   : > { %682 = vmatmul.msk.f32.gmra.mxu1 %vm427_vm2, %v410_v35 }
 0x155   : > { %v457_v36 = vpop.f32.mrf.mxu1 }
 0x156   : > { %v458_v48 = vadd.f32 %v457_v36, %v413_v46 }
 0x15d   : > { %v460_v37 = vpop.f32.mrf.mxu1 }
 0x15e   : > { %v461_v47 = vadd.f32 %v460_v37, %v417_v42 }
 0x165   : > { %v463_v39 = vpop.f32.mrf.mxu1 }
 0x166   : > { %v464_v44 = vadd.f32 %v463_v39, %v421_v41 }
 0x16d   : > { %v466_v43 = vpop.f32.mrf.mxu1 }
 0x16e   : > { %v467_v45 = vadd.f32 %v466_v43, %v425_v38 }
 0x170   : > { %776 = vtanh.f32 %v467_v45 }
 0x171   : > { %778 = vtanh.f32 %v464_v44 }
 0x172   : > { %780 = vtanh.f32 %v461_v47 }
 0x173   : > { %782 = vtanh.f32 %v458_v48 }
 0x176   : > { %v777_v49 = vpop.eup %776 }
 0x177   : > { %517 = vmatpush.msra.mxu2 %v777_v49  ;;  %v779_v50 = vpop.eup %778 }
 0x178   : > { %v781_v51 = vpop.eup %780 }
 0x179   : > { %518 = vmatpush.msra.mxu2 %v779_v50  ;;  %v783_v53 = vpop.eup %782 }
 0x17b   : > { %519 = vmatpush.msra.mxu2 %v781_v51 }
 0x17d   : > { %520 = vmatpush.msra.mxu2 %v783_v53 }
 0x17e   : > { %683 = vmatmul.msk.f32.vlgmr.msra.gmra.mxu2 %vm427_vm2, %v473_v52 }
 0x186   : > { %684 = vmatmul.msk.f32.gmra.mxu2 %vm427_vm2, %v474_v54 }
 0x18e   : > { %685 = vmatmul.msk.f32.gmra.mxu2 %vm427_vm2, %v475_v55 }
 0x196   : > { %686 = vmatmul.msk.f32.gmra.mxu2 %vm427_vm2, %v476_v56 }
 0x201   : > { %v522_v57 = vpop.f32.mrf.mxu2 }
 0x202   : > { %v523_v6 = vadd.f32 %v522_v57, %v479_v4 }
 0x209   : > { %v525_v58 = vpop.f32.mrf.mxu2 }
 0x20a   : > { %v526_v5 = vadd.f32 %v525_v58, %v483_v0 }
 0x211   : > { %v528_v62 = vpop.f32.mrf.mxu2 }
 0x212   : > { %v529_v2 = vadd.f32 %v528_v62, %v487_v63 }
 0x219   : > { %v531_v1 = vpop.f32.mrf.mxu2 }
 0x21a   : > { %v532_v3 = vadd.f32 %v531_v1, %v491_v61 }
 0x21c   : > { %784 = vtanh.f32 %v532_v3 }
 0x21d   : > { %786 = vtanh.f32 %v529_v2 }
 0x21e   : > { %788 = vtanh.f32 %v526_v5 }
 0x21f   : > { %790 = vtanh.f32 %v523_v6 }
 0x222   : > { %v785_v7 = vpop.eup %784 }
 0x223   : > { %560 = vmatpush.msra.mxu3 %v785_v7  ;;  %v787_v8 = vpop.eup %786 }
 0x224   : > { %v789_v9 = vpop.eup %788 }
 0x225   : > { %561 = vmatpush.msra.mxu3 %v787_v8  ;;  %v791_v11 = vpop.eup %790 }
 0x227   : > { %562 = vmatpush.msra.mxu3 %v789_v9 }
 0x229   : > { %563 = vmatpush.msra.mxu3 %v791_v11 }
 0x22a   : > { %687 = vmatmul.msk.f32.vlgmr.msra.gmra.mxu3 %vm427_vm2, %v538_v10 }
 0x2ad   : > { %v565_v13 = vpop.f32.mrf.mxu3 }
 0x2ae   : > { %v566_v14 = vadd.f32 %v565_v13, %v543_v12 }
 0x2b0   : > { %568 = vst [vmem:[%s325_s16] sm:$0x1] %v566_v14 }
 0x2b1   : > { %879 = shalt.err (!%p876_p9)
}
 0x2b2   : > { %700 = dma.vmem_to_hbm [thread:$0]  (%p1010_p6), %s581_s17, 16, %s583_s13, %s570_s15  }
 0x2b3 PF: > { %p717_p11 = scmp.ge.s32.totalorder %s922_s24, 2  ;;  %s594_s7 = sand.u32 1, %s910_s21  }
 0x2b4   : > { %s595_s29 = scalar_lea.sflag [#allocation5], %s594_s7 }
 0x2b5   : > { %p710_p12 = pnand %p717_p11, %p1016_p10 }
 0x2b7   : > { %p711_p13 = pneg %p710_p12 }
 0x2b9   : > { %905 = dma.done.wait (%p711_p13), %s595_s29, 16  }
 0x2ba   : > { %907 = vsyncadd (%p711_p13), %s595_s29, 4294967280  ;;  %p18_p0 = scmp.ge.s32.totalorder %s992_s27, 5   ;;  %s1150_s21 = smov %s914_s22 }
 0x2bb   : > { %s1151_s22 = smov %s918_s23  ;;  %s1152_s23 = smov %s1004_s30 }
 0x2bc   : > { %s1153_s24 = smov %s992_s27  ;;  %20 = sbr.rel (!%p18_p0) target bundleno = 5 (0x5), region = 131 }
 0x2c1   :  { %600 = vsyncpa [#allocation4], 1 }
 0x2c2   :  { %602 = vsyncpa [#allocation4 + $0x1], 1 }
 0x2c3   :  { %603 = vsyncpa [#allocation7], 1 }
 0x2c4   :  { %604 = vsyncpa [#allocation5], 1 }
 0x2c5   :  { %606 = vsyncpa [#allocation5 + $0x1], 1 }

</bundles_post_ra>
